<compile_context>
chip_gen: v5e
topology: v5e:2x2
jax: 0.10.0
libtpu: 0.0.40
codegen_flags: <defaults>
</compile_context>

<pallas_src>
import math

import jax
import jax.numpy as jnp
import numpy as np
from jax.experimental import pallas as pl
from jax.experimental.pallas import tpu as pltpu

GROUPS = 32
EPS = 1e-5


def _pick_row_tile(H):
    """Largest row tile in {32, 16, 8} that divides H and gives >= 2 blocks."""
    for tr in (32, 16, 8):
        if H % tr == 0 and H // tr >= 2:
            return tr
    return H  # small / odd H: single row block


# --------------------------------------------------------------------------
# Kernel 1: per-channel sum / sum-of-squares, accumulated over row blocks.
# --------------------------------------------------------------------------
def _stats_kernel(x_ref, out_ref):
    @pl.when(pl.program_id(1) == 0)
    def _():
        out_ref[...] = jnp.zeros_like(out_ref)

    tr, w, cin = x_ref.shape
    xf = x_ref[...].astype(jnp.float32).reshape(tr * w, cin)
    s = jnp.sum(xf, axis=0, keepdims=True)           # (1, Cin)
    ss = jnp.sum(xf * xf, axis=0, keepdims=True)     # (1, Cin)
    out_ref[...] += jnp.concatenate([s, ss], axis=0)  # (2, Cin)


# --------------------------------------------------------------------------
# Kernel 2: normalize (folded scale/shift) -> SiLU -> 3x3 conv on a row tile.
# --------------------------------------------------------------------------
def _conv_kernel(xc_ref, xt_ref, xb_ref, scale_ref, shift_ref, w_ref, b_ref,
                 o_ref, xpad_ref):
    tr, w, cin = xc_ref.shape
    cout = o_ref.shape[-1]
    r = pl.program_id(1)
    nr = pl.num_programs(1)
    cdt = xpad_ref.dtype

    scale = scale_ref[...].astype(jnp.float32)   # (1, Cin)
    shift = shift_ref[...].astype(jnp.float32)   # (1, Cin)

    def norm_act(v):                             # v: (n, W, Cin) f32
        h = v * scale + shift                    # GroupNorm (folded) in f32
        return h * jax.nn.sigmoid(h)             # SiLU in f32

    # Zero W-halo columns of the padded scratch (cheap, every step -> no
    # cross-step scratch dependence, both grid axes stay 'parallel').
    zcol = jnp.zeros((tr + 2, 1, cin), cdt)
    xpad_ref[:, 0:1, :] = zcol
    xpad_ref[:, w + 1:w + 2, :] = zcol

    # Centre rows.
    xpad_ref[1:tr + 1, 1:w + 1, :] = norm_act(
        xc_ref[...].astype(jnp.float32)).astype(cdt)

    # Halo rows: mask to zero at the image border (padding applies to the
    # conv input, i.e. AFTER GroupNorm + SiLU).
    top = norm_act(xt_ref[...].astype(jnp.float32))          # (1, W, Cin)
    bot = norm_act(xb_ref[...].astype(jnp.float32))          # (1, W, Cin)
    tmask = jnp.where(r > 0, 1.0, 0.0)
    bmask = jnp.where(r < nr - 1, 1.0, 0.0)
    xpad_ref[0:1, 1:w + 1, :] = (top * tmask).astype(cdt)
    xpad_ref[tr + 1:tr + 2, 1:w + 1, :] = (bot * bmask).astype(cdt)

    # im2col: fuse all 9 taps into a single K = 9*Cin matmul (bf16 MXU
    # operands, f32 accumulation).
    patches = [xpad_ref[dy:dy + tr, dx:dx + w, :]
               for dy in range(3) for dx in range(3)]
    p9 = jnp.concatenate(patches, axis=-1).reshape(tr * w, 9 * cin)
    acc = jnp.dot(p9, w_ref[...], preferred_element_type=jnp.float32)
    acc = acc + b_ref[...]                                   # (TR*W, Cout)
    o_ref[...] = acc.reshape(tr, w, cout).astype(o_ref.dtype)


# --------------------------------------------------------------------------
# Wrapper.
# --------------------------------------------------------------------------
def unet_output_layer(x_nchw, params, *, compute_dtype=jnp.bfloat16):
    """x_nchw: (B, Cin, H, W) -> (B, Cout, H, W), PyTorch UNET_OutputLayer."""
    B, Cin, H, W = x_nchw.shape
    assert Cin % GROUPS == 0, "GroupNorm(32, C) requires C % 32 == 0"
    Cout = params["conv_w"].shape[0]
    Cg = Cin // GROUPS

    x = jnp.transpose(x_nchw, (0, 2, 3, 1))      # NCHW -> NHWC
    TR = _pick_row_tile(H)
    R = H // TR

    # ---- stage 1: per-(batch, channel) sums, reduced over row blocks ----
    sums = pl.pallas_call(
        _stats_kernel,
        out_shape=jax.ShapeDtypeStruct((B, 2, Cin), jnp.float32),
        grid=(B, R),
        in_specs=[pl.BlockSpec((None, TR, W, Cin), lambda b, r: (b, r, 0, 0))],
        out_specs=pl.BlockSpec((None, 2, Cin), lambda b, r: (b, 0, 0)),
        compiler_params=pltpu.CompilerParams(
            dimension_semantics=("parallel", "arbitrary")),
    )(x)

    # Tiny O(B*C) math: fold group statistics + affine into per-channel
    # scale/shift vectors (done once per call, outside the hot loop).
    cnt = float(H * W * Cg)
    gs = sums[:, 0, :].reshape(B, GROUPS, Cg).sum(-1)         # (B, G)
    gss = sums[:, 1, :].reshape(B, GROUPS, Cg).sum(-1)        # (B, G)
    mean_g = gs / cnt
    var_g = jnp.maximum(gss / cnt - mean_g * mean_g, 0.0)
    rstd_g = jax.lax.rsqrt(var_g + EPS)
    mean_c = jnp.repeat(mean_g, Cg, axis=1)                   # (B, Cin)
    rstd_c = jnp.repeat(rstd_g, Cg, axis=1)                   # (B, Cin)
    gamma = params["gn_g"].astype(jnp.float32)[None, :]
    beta = params["gn_b"].astype(jnp.float32)[None, :]
    scale = (rstd_c * gamma).reshape(B, 1, Cin).astype(jnp.float32)
    shift = (beta - mean_c * rstd_c * gamma).reshape(B, 1, Cin).astype(jnp.float32)

    # Conv weight: (Cout, Cin, 3, 3) torch layout -> HWIO -> (9*Cin, Cout), bf16.
    w9 = jnp.transpose(params["conv_w"], (2, 3, 1, 0)) \
            .reshape(9 * Cin, Cout).astype(compute_dtype)
    bias = params["conv_b"].reshape(1, Cout).astype(jnp.float32)

    # VMEM budget: double-buffered inputs/outputs + padded scratch + temporaries.
    xb = x.dtype.itemsize
    cb = jnp.dtype(compute_dtype).itemsize
    ob = jnp.dtype(x_nchw.dtype).itemsize
    est = (2 * (TR * W * Cin * xb + 2 * W * Cin * xb + 2 * Cin * 4
                + 9 * Cin * Cout * cb + Cout * 4)
           + 2 * TR * W * Cout * ob
           + (TR + 2) * (W + 2) * Cin * cb
           + TR * W * 9 * Cin * cb          # im2col patch
           + TR * W * Cout * 4              # f32 accumulator
           + TR * W * Cin * 4)              # f32 copy of the centre tile
    vmem_limit = int(min(max(2 * est, 32 * 2 ** 20), 48 * 2 ** 20))

    # ---- stage 2: normalize + SiLU + 3x3 conv, row-tiled with 1-row halo ----
    y = pl.pallas_call(
        _conv_kernel,
        out_shape=jax.ShapeDtypeStruct((B, H, W, Cout), x_nchw.dtype),
        grid=(B, R),
        in_specs=[
            # centre rows of this block
            pl.BlockSpec((None, TR, W, Cin), lambda b, r: (b, r, 0, 0)),
            # one halo row above / below (same array, block size 1 along H)
            pl.BlockSpec((None, 1, W, Cin),
                         lambda b, r: (b, jnp.maximum(r * TR - 1, 0), 0, 0)),
            pl.BlockSpec((None, 1, W, Cin),
                         lambda b, r: (b, jnp.minimum((r + 1) * TR, H - 1), 0, 0)),
            # folded per-channel GroupNorm scale / shift (per batch)
            pl.BlockSpec((None, 1, Cin), lambda b, r: (b, 0, 0)),
            pl.BlockSpec((None, 1, Cin), lambda b, r: (b, 0, 0)),
            # conv weight (9*Cin, Cout) and bias, resident
            pl.BlockSpec((9 * Cin, Cout), lambda b, r: (0, 0)),
            pl.BlockSpec((1, Cout), lambda b, r: (0, 0)),
        ],
        out_specs=pl.BlockSpec((None, TR, W, Cout), lambda b, r: (b, r, 0, 0)),
        scratch_shapes=[pltpu.VMEM((TR + 2, W + 2, Cin), compute_dtype)],
        compiler_params=pltpu.CompilerParams(
            dimension_semantics=("parallel", "parallel"),
            vmem_limit_bytes=vmem_limit),
    )(x, x, x, scale, shift, w9, bias)

    return jnp.transpose(y, (0, 3, 1, 2))        # NHWC -> NCHW


# --------------------------------------------------------------------------
# Parameters + pure-JAX reference (PyTorch semantics, f32 throughout).
# --------------------------------------------------------------------------
def init_params(key, in_ch, out_ch, dtype=jnp.float32):
    k1, k2, k3, k4 = jax.random.split(key, 4)
    kscale = 1.0 / math.sqrt(9 * in_ch)
    return dict(
        gn_g=(1.0 + 0.1 * jax.random.normal(k1, (in_ch,), jnp.float32)).astype(dtype),
        gn_b=(0.1 * jax.random.normal(k2, (in_ch,), jnp.float32)).astype(dtype),
        conv_w=(jax.random.normal(k3, (out_ch, in_ch, 3, 3), jnp.float32) * kscale).astype(dtype),
        conv_b=(0.1 * jax.random.normal(k4, (out_ch,), jnp.float32)).astype(dtype),
    )


def ref_forward(x_nchw, params):
    x = x_nchw.astype(jnp.float32)
    B, C, H, W = x.shape
    Cg = C // GROUPS
    xr = x.reshape(B, GROUPS, Cg, H, W)
    mean = xr.mean(axis=(2, 3, 4), keepdims=True)
    var = xr.var(axis=(2, 3, 4), keepdims=True)
    xn = ((xr - mean) * jax.lax.rsqrt(var + EPS)).reshape(B, C, H, W)
    xn = xn * params["gn_g"].reshape(1, C, 1, 1) + params["gn_b"].reshape(1, C, 1, 1)
    h = xn * jax.nn.sigmoid(xn)
    y = jax.lax.conv_general_dilated(
        h, params["conv_w"].astype(jnp.float32), (1, 1), "SAME",
        dimension_numbers=("NCHW", "OIHW", "NCHW"))
    y = y + params["conv_b"].reshape(1, -1, 1, 1)
    return y.astype(x_nchw.dtype)


if __name__ == "__main__":
    key = jax.random.PRNGKey(0)
    # (B, Cin, Cout, H, W): first config exercises 2 row blocks + halo,
    # second exercises the single-block (R == 1) boundary path.
    for (B, Cin, Cout, H, W) in [(2, 64, 32, 16, 16), (1, 32, 16, 8, 8)]:
        kx, kp, key = jax.random.split(key, 3)
        x = jax.random.normal(kx, (B, Cin, H, W), jnp.float32)
        params = init_params(kp, Cin, Cout)

        out = unet_output_layer(x, params)
        out = jax.block_until_ready(out)
        assert out.shape == (B, Cout, H, W)

        ref = ref_forward(x, params)
        np.testing.assert_allclose(np.asarray(out), np.asarray(ref),
                                   rtol=2e-2, atol=2e-2)
    print("KERNEL_OK")
</pallas_src>

<mosaic_0001>
module attributes {stable_mosaic.version = 11 : i64} {
  func.func @_stats_kernel(%arg0: i32, %arg1: i32, %arg2: memref<1x8x16x64xf32, #tpu.memory_space<vmem>>, %arg3: memref<1x2x64xf32, #tpu.memory_space<vmem>>) attributes {dimension_semantics = [#tpu.dimension_semantics<parallel>, #tpu.dimension_semantics<arbitrary>], iteration_bounds = array<i64: 2, 2>, scalar_prefetch = 0 : i64, scratch_operands = 0 : i64, tpu.core_type = #tpu.core_type<tc>, window_params = [{transform_indices = @transform_0, window_bounds = array<i64: 1, 8, 16, 64>}, {transform_indices = @transform_1, window_bounds = array<i64: 1, 2, 64>}]} {
    %c0_i32 = arith.constant 0 : i32
    %0 = arith.cmpi eq, %arg1, %c0_i32 : i32
    %1 = arith.extui %0 : i1 to i32
    %c0_i32_0 = arith.constant 0 : i32
    %2 = arith.cmpi ne, %1, %c0_i32_0 : i32
    scf.if %2 {
      %cst_11 = arith.constant 0.000000e+00 : f32
      %18 = vector.broadcast %cst_11 : f32 to vector<2x64xf32>
      %c0_12 = arith.constant 0 : index
      %c0_13 = arith.constant 0 : index
      %c0_14 = arith.constant 0 : index
      %19 = vector.load %arg3[%c0_12, %c0_13, %c0_14] : memref<1x2x64xf32, #tpu.memory_space<vmem>>, vector<1x2x64xf32>
      %20 = vector.shape_cast %19 : vector<1x2x64xf32> to vector<2x64xf32>
      %21 = vector.shape_cast %18 : vector<2x64xf32> to vector<1x2x64xf32>
      tpu.vector_store %arg3[%c0_12, %c0_13, %c0_14], %21 {strides = array<i32>} : memref<1x2x64xf32, #tpu.memory_space<vmem>>, vector<1x2x64xf32>,
    } else {
    }
    %c0 = arith.constant 0 : index
    %c0_1 = arith.constant 0 : index
    %c0_2 = arith.constant 0 : index
    %c0_3 = arith.constant 0 : index
    %3 = vector.load %arg2[%c0, %c0_1, %c0_2, %c0_3] : memref<1x8x16x64xf32, #tpu.memory_space<vmem>>, vector<1x8x16x64xf32>
    %4 = vector.shape_cast %3 : vector<1x8x16x64xf32> to vector<8x16x64xf32>
    %5 = vector.shape_cast %4 : vector<8x16x64xf32> to vector<128x64xf32>
    %cst = arith.constant dense<0.000000e+00> : vector<64xf32>
    %6 = vector.multi_reduction <add>, %5, %cst [0] : vector<128x64xf32> to vector<64xf32>
    %7 = vector.shape_cast %6 : vector<64xf32> to vector<1x64xf32>
    %8 = arith.mulf %5, %5 : vector<128x64xf32>
    %cst_4 = arith.constant dense<0.000000e+00> : vector<64xf32>
    %9 = vector.multi_reduction <add>, %8, %cst_4 [0] : vector<128x64xf32> to vector<64xf32>
    %10 = vector.shape_cast %9 : vector<64xf32> to vector<1x64xf32>
    %c0_5 = arith.constant 0 : index
    %c0_6 = arith.constant 0 : index
    %c0_7 = arith.constant 0 : index
    %11 = vector.load %arg3[%c0_5, %c0_6, %c0_7] : memref<1x2x64xf32, #tpu.memory_space<vmem>>, vector<1x2x64xf32>
    %12 = vector.shape_cast %11 : vector<1x2x64xf32> to vector<2x64xf32>
    %13 = tpu.concatenate %7, %10 in 0 : vector<1x64xf32>, vector<1x64xf32> -> vector<2x64xf32>
    %14 = arith.addf %12, %13 : vector<2x64xf32>
    %c0_8 = arith.constant 0 : index
    %c0_9 = arith.constant 0 : index
    %c0_10 = arith.constant 0 : index
    %15 = vector.load %arg3[%c0_8, %c0_9, %c0_10] : memref<1x2x64xf32, #tpu.memory_space<vmem>>, vector<1x2x64xf32>
    %16 = vector.shape_cast %15 : vector<1x2x64xf32> to vector<2x64xf32>
    %17 = vector.shape_cast %14 : vector<2x64xf32> to vector<1x2x64xf32>
    tpu.vector_store %arg3[%c0_8, %c0_9, %c0_10], %17 {strides = array<i32>} : memref<1x2x64xf32, #tpu.memory_space<vmem>>, vector<1x2x64xf32>,
    return
  }
  func.func @transform_0(%arg0: i32, %arg1: i32) -> (i32, i32, i32, i32) {
    %c0_i32 = arith.constant 0 : i32
    %c0_i32_0 = arith.constant 0 : i32
    %c0_i32_1 = arith.constant 0 : i32
    return %arg0, %arg1, %c0_i32, %c0_i32_0 : i32, i32, i32, i32
  }
  func.func @transform_1(%arg0: i32, %arg1: i32) -> (i32, i32, i32) {
    %c0_i32 = arith.constant 0 : i32
    %c0_i32_0 = arith.constant 0 : i32
    %c0_i32_1 = arith.constant 0 : i32
    return %arg0, %c0_i32, %c0_i32_0 : i32, i32, i32
  }
}

</mosaic_0001>

<bundles_post_ra>
// kernel: tpu_custom_call.1
= control target key start
LH: loop header
LB: loop body
LE: loop exit
PB: predicated region body
PF: predicated region fallthrough
CT: control target
= control target key end

     0   :  { %6 = vsyncpa [#allocation3], 0  ;;  %s891_s0 = inlined_call_operand.hbm [shape: f32[2,16,16,64], index: 0, kind: input, shape index: {}]   ;;  %s892_s1 = inlined_call_operand.hbm [shape: f32[2,2,64], index: 1, kind: output, shape index: {}]  }
   0x1   :  { %8 = vsyncpa [#allocation3 + $0x1], 0 }
   0x2   :  { %9 = vsyncpa [#allocation4], 0 }
   0x3   :  { %11 = vsyncpa [#allocation4 + $0x1], 0  ;;  %s664_s6 = smov 0   ;;  %s666_s7 = smov 0  }
   0x4   :  { %s668_s8 = smov 0   ;;  %s670_s9 = smov 0  }
   0x5   :  { %s672_s10 = smov 0   ;;  %s674_s11 = smov 0  }
   0x6   :  { %s676_s12 = smov 0   ;;  %s678_s13 = smov 0  }
   0x7   :  { %s680_s14 = smov 0   ;;  %s682_s15 = smov 0  }
   0x8   :  { %s684_s16 = smov 0  }
   0x9 LB: > { %896 = sst [smem:[#allocation8_spill]] %s629_s11  ;;  %s374_s17 = sadd.s32 4294967295, %s649_s16   ;;  %s649_s16 = sphi %s684_s16, %s17_s16   ;;  %s645_s15 = sphi %s682_s15, %s916_s15   ;;  %s641_s14 = sphi %s680_s14, %s915_s14   ;;  %s637_s13 = sphi %s678_s13, %s914_s13   ;;  %s633_s12 = sphi %s676_s12, %s913_s12   ;;  %s629_s11 = sphi %s674_s11, %s905_s11   ;;  %s625_s10 = sphi %s672_s10, %s912_s10   ;;  %s621_s9 = sphi %s670_s9, %s911_s9   ;;  %s617_s8 = sphi %s668_s8, %s910_s8   ;;  %s613_s7 = sphi %s666_s7, %s909_s7   ;;  %s609_s6 = sphi %s664_s6, %s908_s6  }
   0xa   : > { %s375_s18 = sadd.s32 4294967294, %s649_s16   ;;  %s26_s19 = sadd.s32 1, %s641_s14 }
   0xb   : > { %s29_s20 = sadd.s32 1, %s645_s15  ;;  %p27_p0 = scmp.ge.s32.totalorder %s26_s19, 2 }
   0xc   : > { %s38_s21 = sadd.s32 1, %s629_s11  ;;  %p45_p1 = scmp.ne.s32.totalorder %s629_s11, %s625_s10 }
   0xd   : > { %p46_p2 = scmp.eq.s32.totalorder %s649_s16, 0  ;;  %s918_s19 = smov (%p27_p0, %s26_s19), 0 }
   0xe   : > { %897 = sst [smem:[#allocation9_spill]] %s918_s19  ;;  %s920_s20 = smov (!%p27_p0, %s29_s20), %s645_s15 }
   0xf   : > { %s34_s22 = ssub.s32 %s641_s14, %s918_s19  ;;  %p730_p3 = por %p46_p2, %p45_p1 }
  0x10   : > { %p31_p4 = scmp.ge.s32.totalorder %s920_s20, 2  ;;  %p51_p5 = scmp.ne.s32.totalorder %s625_s10, %s621_s9 }
  0x11   : > { %p52_p6 = scmp.eq.s32.totalorder %s374_s17, 0  ;;  %s64_s24 = sadd.s32 1, %s617_s8 }
  0x12   : > { %s922_s20 = smov (%p31_p4, %s920_s20), 0  ;;  %p74_p8 = scmp.ne.s32.totalorder %s617_s8, %s613_s7 }
  0x13   : > { %899 = sst [smem:[#allocation10_spill]] %s922_s20  ;;  %p738_p7 = por %p52_p6, %p51_p5 }
  0x14   : > { %s33_s26 = ssub.s32 %s645_s15, %s922_s20  ;;  %p75_p9 = scmp.eq.s32.totalorder %s374_s17, 3 }
  0x15   : > { %s35_s27 = sor.u32 %s34_s22, %s33_s26  ;;  %p62_p10 = scmp.eq.s32.totalorder %s33_s26, 0 }
  0x16   : > { %p36_p11 = scmp.eq.s32.totalorder %s35_s27, 0  ;;  %p746_p12 = por %p75_p9, %p74_p8 }
  0x17   : > { %s751_s29 = scalar_select %p62_p10, %s617_s8, %s64_s24  }
  0x18   : > { %s754_s30 = scalar_select %p36_p11, %s629_s11, %s38_s21  }
  0x19   : > { %p80_p13 = scmp.ne.s32.totalorder %s613_s7, %s609_s6  ;;  %p81_p0 = scmp.eq.s32.totalorder %s375_s18, 3 }
  0x1a   : > { %902 = sst [smem:[#allocation11_spill]] %s754_s30  ;;  %p404_p1 = scmp.lt.s32.totalorder %s649_s16, 4 }
  0x1b   : > { %p759_p2 = por %p81_p0, %p80_p13  ;;  %s101_s3 = sand.u32 1, %s629_s11  }
  0x1c   : > { %s378_s4 = sshll.u32 %s101_s3, 7  ;;  %s391_s5 = sshll.u32 %s641_s14, 4 }
  0x1d   : > { %s381_s9 = sshll.u32 %s645_s15, 5  ;;  %s105_s17 = scalar_lea.vmem [#allocation2], %s378_s4 }
  0x1e   : > { %s116_s22 = sshll.u32 %s105_s17, 4  ;;  %s111_s26 = sadd.s32 %s391_s5, %s381_s9  ;;  %s117_s22 = int_to_ptr.vmem [resolvable:$true] %s116_s22 }
  0x1f   : > { %s382_s24 = sshll.u32 %s111_s26, 3  ;;  %p397_p4 = pnand %p404_p1, %p730_p3 }
  0x20   : > { %s113_s27 = scalar_lea.hbm %s891_s0, %s382_s24  ;;  %s102_s19 = scalar_lea.sflag [#allocation3], %s101_s3 }
  0x21   : > { %s114_s20 = sshll.u32 %s113_s27, 4  ;;  %s651_s30 = smov 128   ;;  %s115_s20 = int_to_ptr.hbm [resolvable:$true] %s114_s20 }
  0x22   : > { %s652_s11 = smov 8   ;;  %p383_p5 = scmp.ge.s32.totalorder %s649_s16, 1 }
  0x23   : > { %399 = dma.hbm_to_vmem [thread:$0]  (!%p397_p4), %s115_s20, 2048, %s117_s22, %s102_s19, %s651_s30, %s651_s30, %s652_s11  }
  0x24   : > { %p124_p6 = scmp.lt.s32.totalorder %s649_s16, 5 }
  0x26   : > { %p125_p8 = pnand %p383_p5, %p124_p6 }
  0x27   : > { %s130_s4 = sand.u32 (!%p125_p8), 1, %s625_s10  }
  0x28   : > { %128 = sbr.rel (%p125_p8) target bundleno = 108 (0x6c), region = 24  ;;  %s384_s5 = sshll.u32 (!%p125_p8), %s130_s4, 7 }
  0x29   : > { %s131_s23 = scalar_lea.sflag (!%p125_p8), [#allocation3], %s130_s4  ;;  %s774_s9 = scalar_lea.vmem (!%p125_p8), [#allocation2], %s384_s5 }
  0x2d   : > { %600 = dma.done.wait (%p738_p7), %s131_s23, 2048  }
  0x2e   : > { %602 = vsyncadd (%p738_p7), %s131_s23, 4294965248  ;;  %s151_s3 = sand.u32 1, %s613_s7   ;;  %p386_p3 = scmp.ne.s32.totalorder %s633_s12, 0 }
  0x2f   : > { %s385_s11 = sshll.u32 %s151_s3, 1 }
  0x30   : > { %s783_s19 = scalar_lea.vmem [#allocation5], %s385_s11  ;;  %158 = sbr.rel (%p386_p3) target bundleno = 55 (0x37), region = 32 }
  0x35   : > { %vm159_vm0 = vcmask 517120   ;;  %v653_v0 = vmov 0.0  }
  0x36   : > { %160 = vst.msk [vmem:[%s783_s19] sm:$0x3] %vm159_vm0, %v653_v0 }
  0x37 PF: > { %v161_v1 = vld [vmem:[%s774_s9] sm:$0xff]  ;;  %v162_v2 = vld [vmem:[%s774_s9 + $0x8] sm:$0xff]  ;;  %v163_v3 = vld [vmem:[%s774_s9 + $0x10] sm:$0xff]  ;;  %vm177_vm1 = vcmask 523264   ;;  %s388_s12 = sshll.u32 %s637_s13, 1  ;;  %vm269_vm2 = vcmask 1040384  }
  0x38   : > { %v178_v4 = vsel %vm177_vm1, %v161_v1, 0.0  ;;  %v179_v5 = vsel %vm177_vm1, %v162_v2, 0.0  ;;  %v181_v6 = vsel %vm177_vm1, %v163_v3, 0.0  ;;  %v164_v7 = vld [vmem:[%s774_s9 + $0x18] sm:$0xff]  ;;  %v165_v10 = vld [vmem:[%s774_s9 + $0x20] sm:$0xff]  ;;  %v166_v13 = vld [vmem:[%s774_s9 + $0x28] sm:$0xff]  ;;  %v215_v15 = vmul.f32 %v161_v1, %v161_v1  ;;  %s285_s30 = scalar_lea.hbm %s892_s1, %s388_s12 }
  0x39   : > { %v180_v8 = vadd.f32 %v179_v5, %v178_v4  ;;  %v183_v9 = vsel %vm177_vm1, %v164_v7, 0.0  ;;  %v185_v12 = vsel %vm177_vm1, %v165_v10, 0.0  ;;  %v216_v16 = vmul.f32 %v162_v2, %v162_v2  ;;  %v167_v19 = vld [vmem:[%s774_s9 + $0x30] sm:$0xff]  ;;  %v168_v24 = vld [vmem:[%s774_s9 + $0x38] sm:$0xff]  ;;  %v169_v31 = vld [vmem:[%s774_s9 + $0x40] sm:$0xff]  ;;  %s287_s17 = sshll.u32 %s783_s19, 4  ;;  %s288_s17 = int_to_ptr.vmem [resolvable:$true] %s287_s17 }
  0x3a   : > { %v217_v17 = vmul.f32 %v163_v3, %v163_v3  ;;  %v187_v18 = vsel %vm177_vm1, %v166_v13, 0.0  ;;  %v218_v21 = vmul.f32 %v164_v7, %v164_v7  ;;  %v189_v22 = vsel %vm177_vm1, %v167_v19, 0.0  ;;  %v170_v37 = vld [vmem:[%s774_s9 + $0x48] sm:$0xff]  ;;  %v171_v43 = vld [vmem:[%s774_s9 + $0x50] sm:$0xff]  ;;  %v172_v49 = vld [vmem:[%s774_s9 + $0x58] sm:$0xff]  ;;  %s289_s22 = sshll.u32 %s285_s30, 4  ;;  %s290_s22 = int_to_ptr.hbm [resolvable:$true] %s289_s22 }
  0x3b   : > { %v182_v11 = vadd.f32 %v181_v6, %v180_v8  ;;  %v219_v23 = vmul.f32 %v165_v10, %v165_v10  ;;  %v231_v26 = vsel %vm177_vm1, %v215_v15, 0.0  ;;  %v232_v27 = vsel %vm177_vm1, %v216_v16, 0.0  ;;  %v173_v55 = vld [vmem:[%s774_s9 + $0x60] sm:$0xff]  ;;  %v174_v61 = vld [vmem:[%s774_s9 + $0x68] sm:$0xff]  ;;  %v175_v3 = vld [vmem:[%s774_s9 + $0x70] sm:$0xff]  ;;  %s275_s13 = scalar_lea.sflag [#allocation4], %s151_s3 }
  0x3c   : > { %v234_v28 = vsel %vm177_vm1, %v217_v17, 0.0  ;;  %v191_v29 = vsel %vm177_vm1, %v168_v24, 0.0  ;;  %v233_v30 = vadd.f32 %v232_v27, %v231_v26  ;;  %v220_v33 = vmul.f32 %v166_v13, %v166_v13  ;;  %s541_s26 = sshra.s32 %s290_s22, 4  ;;  %s547_s27 = scalar_lea.hbm %s892_s1, 4  ;;  %s542_s26 = int_to_ptr.hbm [resolvable:$true] %s541_s26 }
  0x3d   : > { %v184_v14 = vadd.f32 %v183_v9, %v182_v11  ;;  %v236_v34 = vsel %vm177_vm1, %v218_v21, 0.0  ;;  %v193_v35 = vsel %vm177_vm1, %v169_v31, 0.0  ;;  %v221_v39 = vmul.f32 %v167_v19, %v167_v19  ;;  %v176_v9 = vld [vmem:[%s774_s9 + $0x78] sm:$0xff]  ;;  %s543_s24 = scalar_lea.hbm %s542_s26, 2  ;;  %p548_p11 = scmp.lt.s32.totalorder %s542_s26, %s892_s1 }
  0x3e   : > { %v235_v36 = vadd.f32 %v234_v28, %v233_v30  ;;  %v238_v40 = vsel %vm177_vm1, %v219_v23, 0.0  ;;  %v195_v41 = vsel %vm177_vm1, %v170_v37, 0.0  ;;  %v222_v45 = vmul.f32 %v168_v24, %v168_v24  ;;  %p544_p7 = scmp.ne.s32.totalorder %s542_s26, %s543_s24  ;;  %p549_p13 = scmp.lt.s32.totalorder %s547_s27, %s543_s24 }
  0x3f   : > { %v186_v20 = vadd.f32 %v185_v12, %v184_v14  ;;  %v240_v46 = vsel %vm177_vm1, %v220_v33, 0.0  ;;  %v197_v47 = vsel %vm177_vm1, %v171_v43, 0.0  ;;  %v223_v51 = vmul.f32 %v169_v31, %v169_v31 }
  0x40   : > { %v237_v42 = vadd.f32 %v236_v34, %v235_v36  ;;  %v242_v52 = vsel %vm177_vm1, %v221_v39, 0.0  ;;  %v199_v53 = vsel %vm177_vm1, %v172_v49, 0.0  ;;  %v224_v57 = vmul.f32 %v170_v37, %v170_v37  ;;  %p545_p9 = pnand %p544_p7, %p746_p12  ;;  %p550_p0 = por %p549_p13, %p548_p11 }
  0x41   : > { %v188_v25 = vadd.f32 %v187_v18, %v186_v20  ;;  %v244_v58 = vsel %vm177_vm1, %v222_v45, 0.0  ;;  %v201_v59 = vsel %vm177_vm1, %v173_v55, 0.0  ;;  %v225_v63 = vmul.f32 %v171_v43, %v171_v43  ;;  %v268_v43 = vld [vmem:[%s783_s19] sm:$0x3] }
  0x42   : > { %v239_v48 = vadd.f32 %v238_v40, %v237_v42  ;;  %v246_v0 = vsel %vm177_vm1, %v223_v51, 0.0  ;;  %v203_v1 = vsel %vm177_vm1, %v174_v61, 0.0  ;;  %v226_v5 = vmul.f32 %v172_v49, %v172_v49  ;;  %p546_p10 = pneg %p545_p9 }
  0x43   : > { %v190_v32 = vadd.f32 %v189_v22, %v188_v25  ;;  %v248_v6 = vsel %vm177_vm1, %v224_v57, 0.0  ;;  %v205_v7 = vsel %vm177_vm1, %v175_v3, 0.0  ;;  %v227_v11 = vmul.f32 %v173_v55, %v173_v55 }
  0x44   : > { %v241_v54 = vadd.f32 %v240_v46, %v239_v48  ;;  %v250_v12 = vsel %vm177_vm1, %v225_v63, 0.0  ;;  %v207_v13 = vsel %vm177_vm1, %v176_v9, 0.0  ;;  %v228_v16 = vmul.f32 %v174_v61, %v174_v61  ;;  %p551_p1 = pnand %p550_p0, %p546_p10 }
  0x45   : > { %v192_v38 = vadd.f32 %v191_v29, %v190_v32  ;;  %v252_v17 = vsel %vm177_vm1, %v226_v5, 0.0  ;;  %v229_v20 = vmul.f32 %v175_v3, %v175_v3  ;;  %v254_v21 = vsel %vm177_vm1, %v227_v11, 0.0 }
  0x46   : > { %v243_v60 = vadd.f32 %v242_v52, %v241_v54  ;;  %v230_v24 = vmul.f32 %v176_v9, %v176_v9  ;;  %v256_v25 = vsel %vm177_vm1, %v228_v16, 0.0  ;;  %vm272_vm3 = vcmask 517120  }
  0x47   : > { %v194_v44 = vadd.f32 %v193_v35, %v192_v38  ;;  %v258_v28 = vsel %vm177_vm1, %v229_v20, 0.0 }
  0x48   : > { %v245_v2 = vadd.f32 %v244_v58, %v243_v60  ;;  %v260_v30 = vsel %vm177_vm1, %v230_v24, 0.0 }
  0x49   : > { %v196_v50 = vadd.f32 %v195_v41, %v194_v44 }
  0x4a   : > { %v247_v8 = vadd.f32 %v246_v0, %v245_v2 }
  0x4b   : > { %v198_v56 = vadd.f32 %v197_v47, %v196_v50 }
  0x4c   : > { %v249_v14 = vadd.f32 %v248_v6, %v247_v8 }
  0x4d   : > { %v200_v62 = vadd.f32 %v199_v53, %v198_v56 }
  0x4e   : > { %v251_v18 = vadd.f32 %v250_v12, %v249_v14 }
  0x4f   : > { %v202_v4 = vadd.f32 %v201_v59, %v200_v62 }
  0x50   : > { %v253_v22 = vadd.f32 %v252_v17, %v251_v18 }
  0x51   : > { %v204_v10 = vadd.f32 %v203_v1, %v202_v4 }
  0x52   : > { %v255_v26 = vadd.f32 %v254_v21, %v253_v22 }
  0x53   : > { %v206_v15 = vadd.f32 %v205_v7, %v204_v10 }
  0x54   : > { %v257_v29 = vadd.f32 %v256_v25, %v255_v26 }
  0x55   : > { %v208_v19 = vadd.f32 %v207_v13, %v206_v15 }
  0x56   : > { %v259_v32 = vadd.f32 %v258_v28, %v257_v29 }
  0x57   : > { %v209_v23 = vrot.slane %v208_v19, 4 }
  0x58   : > { %v261_v33 = vadd.f32 %v260_v30, %v259_v32 }
  0x59   : > { %v210_v27 = vadd.f32 %v209_v23, %v208_v19 }
  0x5a   : > { %v262_v35 = vrot.slane %v261_v33, 4 }
  0x5b   : > { %v211_v31 = vrot.slane %v210_v27, 2 }
  0x5c   : > { %v263_v36 = vadd.f32 %v262_v35, %v261_v33 }
  0x5d   : > { %v212_v34 = vadd.f32 %v211_v31, %v210_v27 }
  0x5e   : > { %v264_v38 = vrot.slane %v263_v36, 2 }
  0x5f   : > { %v213_v37 = vrot.slane %v212_v34, 1 }
  0x60   : > { %v265_v39 = vadd.f32 %v264_v38, %v263_v36 }
  0x61   : > { %v214_v40 = vadd.f32 %v213_v37, %v212_v34 }
  0x62   : > { %v266_v41 = vrot.slane %v265_v39, 1 }
  0x64   : > { %v267_v42 = vadd.f32 %v266_v41, %v265_v39 }
  0x66   : > { %v270_v44 = vsel %vm269_vm2, %v214_v40, %v267_v42 }
  0x67   : > { %v271_v45 = vadd.f32 %v270_v44, %v268_v43 }
  0x69   : > { %273 = vst.msk [vmem:[%s783_s19] sm:$0x3] %vm272_vm3, %v271_v45 }
  0x6a   : > { %554 = shalt.err (!%p551_p1)
}
  0x6b   : > { %394 = dma.vmem_to_hbm [thread:$0]  (%p746_p12), %s288_s17, 32, %s290_s22, %s275_s13  }
  0x6c PF: > { %p405_p4 = scmp.ge.s32.totalorder %s649_s16, 2  ;;  %s301_s23 = sand.u32 1, %s609_s6  }
  0x6d   : > { %s302_s9 = scalar_lea.sflag [#allocation4], %s301_s23 }
  0x6e   : > { %p401_p5 = pnand %p405_p4, %p759_p2 }
  0x70   : > { %p402_p6 = pneg %p401_p5 }
  0x72   : > { %604 = dma.done.wait (%p402_p6), %s302_s9, 32  }
  0x73   : > { %606 = vsyncadd (%p402_p6), %s302_s9, 4294967264  ;;  %s17_s16 = sadd.s32 1, %s649_s16   ;;  %s904_s28 = sld [smem:[#allocation8_spill]] }
  0x74   : > { %p14_p8 = scmp.ge.s32.totalorder %s17_s16, 6   ;;  %s905_s11 = sld [smem:[#allocation11_spill]] }
  0x75   : > { %s906_s3 = sld [smem:[#allocation9_spill]]  ;;  %s908_s6 = smov %s613_s7 }
  0x76   : > { %s907_s19 = sld [smem:[#allocation10_spill]]  ;;  %s909_s7 = smov %s617_s8 }
  0x77   : > { %s910_s8 = smov %s751_s29  ;;  %s911_s9 = smov %s625_s10 }
  0x78   : > { %s913_s12 = smov %s641_s14  ;;  %s914_s13 = smov %s645_s15 }
  0x79   : > { %s912_s10 = smov %s904_s28  ;;  %16 = sbr.rel (!%p14_p8) target bundleno = 9 (0x9), region = 73 }
  0x7b   : > { %s915_s14 = smov %s906_s3 }
  0x7c   : > { %s916_s15 = smov %s907_s19 }
  0x7e   :  { %308 = vsyncpa [#allocation3], 1 }
  0x7f   :  { %310 = vsyncpa [#allocation3 + $0x1], 1 }
  0x80   :  { %311 = vsyncpa [#allocation4], 1 }
  0x81   :  { %313 = vsyncpa [#allocation4 + $0x1], 1 }

</bundles_post_ra>
